<compile_context>
chip_gen: v6e
topology: v6e:2x2x1
jax: 0.10.0
libtpu: 0.0.40
codegen_flags: <defaults>
</compile_context>

<pallas_src>
import functools

import jax
import jax.numpy as jnp
from jax import lax
from jax.experimental import pallas as pl
from jax.experimental.pallas import tpu as pltpu


def _mha_core(q, kv, w_out, b_out, *, heads, dim_head, block_b, n_q, n_kv,
              compute_dtype):
    """Multi-head attention core on already-projected activations.

    q:     (block_b*n_q,  heads*dim_head) f32, attention scale already folded.
    kv:    (block_b*n_kv, 2*heads*dim_head) f32, [k | v] along lanes.
    w_out: (heads*dim_head, dim) in compute_dtype.
    b_out: (1, dim) f32.
    Returns (block_b*n_q, dim) f32.
    """
    H = heads * dim_head
    rq = block_b * n_q
    dim = w_out.shape[-1]

    # Start the accumulator from the broadcast bias (saves a final add).
    y = jnp.broadcast_to(b_out, (rq, dim)).astype(jnp.float32)
    for h in range(heads):                      # static unroll; heads is small
        lo = h * dim_head
        qh = q[:, lo:lo + dim_head].reshape(block_b, n_q, dim_head)
        kh = kv[:, lo:lo + dim_head].reshape(block_b, n_kv, dim_head)
        vh = kv[:, H + lo:H + lo + dim_head].reshape(block_b, n_kv, dim_head)

        # sim[b, i, j] = sum_d q[b,i,d] * k[b,j,d]   (batched over block_b)
        sim = lax.dot_general(
            qh.astype(compute_dtype), kh.astype(compute_dtype),
            (((2,), (2,)), ((0,), (0,))),
            preferred_element_type=jnp.float32)            # (tb, n_q, n_kv)

        sim = sim - jnp.max(sim, axis=-1, keepdims=True)   # f32 stats
        p = jnp.exp(sim)                                    # EUP
        inv_l = pl.reciprocal(jnp.sum(p, axis=-1, keepdims=True), approx=True)

        # PV with un-normalized probabilities; normalize the (smaller) output.
        oh = lax.dot_general(
            p.astype(compute_dtype), vh.astype(compute_dtype),
            (((2,), (1,)), ((0,), (0,))),
            preferred_element_type=jnp.float32)            # (tb, n_q, d)
        oh = oh * inv_l

        # Accumulate this head's slice of the output projection instead of
        # concatenating heads along the lane axis.
        y = y + jnp.dot(oh.reshape(rq, dim_head).astype(compute_dtype),
                        w_out[lo:lo + dim_head, :],
                        preferred_element_type=jnp.float32)
    return y


def _self_attn_kernel(x_ref, wqkv_ref, wout_ref, bout_ref, out_ref, *,
                      heads, dim_head, block_b, n, compute_dtype):
    dim = x_ref.shape[-1]
    H = heads * dim_head
    x2 = x_ref[...].reshape(block_b * n, dim).astype(compute_dtype)
    # One fused (rows, dim) x (dim, 3H) projection on the MXU.
    qkv = jnp.dot(x2, wqkv_ref[...].astype(compute_dtype),
                  preferred_element_type=jnp.float32)
    y = _mha_core(qkv[:, :H], qkv[:, H:],
                  wout_ref[...].astype(compute_dtype),
                  bout_ref[...].astype(jnp.float32),
                  heads=heads, dim_head=dim_head, block_b=block_b,
                  n_q=n, n_kv=n, compute_dtype=compute_dtype)
    out_ref[...] = y.reshape(block_b, n, dim).astype(out_ref.dtype)


def _cross_attn_kernel(x_ref, ctx_ref, wq_ref, wkv_ref, wout_ref, bout_ref,
                       out_ref, *, heads, dim_head, block_b, n_q, n_kv,
                       compute_dtype):
    dim = x_ref.shape[-1]
    x2 = x_ref[...].reshape(block_b * n_q, dim).astype(compute_dtype)
    c2 = ctx_ref[...].reshape(block_b * n_kv, dim).astype(compute_dtype)
    q = jnp.dot(x2, wq_ref[...].astype(compute_dtype),
                preferred_element_type=jnp.float32)
    kv = jnp.dot(c2, wkv_ref[...].astype(compute_dtype),
                 preferred_element_type=jnp.float32)
    y = _mha_core(q, kv,
                  wout_ref[...].astype(compute_dtype),
                  bout_ref[...].astype(jnp.float32),
                  heads=heads, dim_head=dim_head, block_b=block_b,
                  n_q=n_q, n_kv=n_kv, compute_dtype=compute_dtype)
    out_ref[...] = y.reshape(block_b, n_q, dim).astype(out_ref.dtype)


def prepare_params(w_q, w_k, w_v, w_out, b_out, heads, dim_head):
    """One-time host-side weight prep (outside the per-call hot path).

    w_q/w_k/w_v: (dim, heads*dim_head)   -- transposed nn.Linear weights
    w_out:       (heads*dim_head, dim)
    b_out:       (dim,)
    The attention scale is folded into the q columns; k/v are fused so the
    self-attention path needs a single (dim, 3H) projection matmul. Pre-split
    q / kv weights are also stored for the cross-attention path.
    """
    scale = dim_head ** (-0.5)
    w_q_scaled = w_q * scale
    w_kv = jnp.concatenate([w_k, w_v], axis=1)
    return {
        "heads": int(heads),
        "dim_head": int(dim_head),
        "w_qkv": jnp.concatenate([w_q_scaled, w_kv], axis=1),  # (dim, 3H)
        "w_q": w_q_scaled,                 # (dim, H), pre-scaled
        "w_kv": w_kv,                      # (dim, 2H)
        "w_out": w_out,                    # (H, dim)
        "b_out": b_out.reshape(1, -1),     # (1, dim)
    }


def _pick_block_b(batch, n):
    """Largest batch tile that divides `batch`, keeps block_b*n <= 512 rows,
    and leaves >= 2 grid steps (so both v7x TensorCores get work)."""
    best = 1
    for cand in range(1, batch + 1):
        if batch % cand:
            continue
        if cand * n > 512:
            continue
        if batch >= 2 and batch // cand < 2:
            continue
        best = cand
    return best


def _cost_estimate(B, N, n_kv, dim, heads, dim_head, itemsize, cross):
    H = heads * dim_head
    if cross:
        proj = 2 * B * N * dim * H + 2 * B * n_kv * dim * 2 * H
    else:
        proj = 2 * B * N * dim * 3 * H
    attn = 4 * B * heads * N * n_kv * dim_head          # QK^T + PV
    outp = 2 * B * N * H * dim
    w_bytes = (dim * 3 * H + H * dim + dim) * itemsize
    act_bytes = (B * N * dim * 2 + B * n_kv * dim * (1 if cross else 0)) * itemsize
    return pl.CostEstimate(flops=int(proj + attn + outp),
                           transcendentals=int(B * heads * N * n_kv),
                           bytes_accessed=int(w_bytes + act_bytes))


def cross_frame_attention(x, params, context=None, *, block_b=None,
                          compute_dtype=None, interpret=False):
    """x: (B, N, dim). context: optional (B, M, dim). Returns (B, N, dim)."""
    B, N, dim = x.shape
    heads = params["heads"]
    dim_head = params["dim_head"]
    H = heads * dim_head
    if compute_dtype is None:
        # Pass jnp.bfloat16 here on v6e/v7x for realistic model dims.
        compute_dtype = x.dtype
    n_kv = N if context is None else context.shape[1]
    if block_b is None:
        block_b = _pick_block_b(B, max(N, n_kv))
    assert B % block_b == 0, (B, block_b)
    grid = (B // block_b,)

    itemsize = x.dtype.itemsize
    w_bytes = (params["w_qkv"].size + params["w_out"].size
               + params["b_out"].size) * itemsize
    act_bytes = 2 * block_b * (2 * N + n_kv) * dim * itemsize  # double-buffered
    vmem_limit = int(min(max(4 * (w_bytes + act_bytes), 16 * 2 ** 20),
                         32 * 2 ** 20))
    cparams = pltpu.CompilerParams(dimension_semantics=("parallel",),
                                   vmem_limit_bytes=vmem_limit)
    cost = _cost_estimate(B, N, n_kv, dim, heads, dim_head, itemsize,
                          cross=context is not None)

    def w_spec(shape):
        return pl.BlockSpec(shape, lambda i: (0, 0))

    if context is None:
        kernel = functools.partial(
            _self_attn_kernel, heads=heads, dim_head=dim_head,
            block_b=block_b, n=N, compute_dtype=compute_dtype)
        return pl.pallas_call(
            kernel,
            out_shape=jax.ShapeDtypeStruct((B, N, dim), x.dtype),
            grid=grid,
            in_specs=[
                pl.BlockSpec((block_b, N, dim), lambda i: (i, 0, 0)),
                w_spec((dim, 3 * H)),
                w_spec((H, dim)),
                w_spec((1, dim)),
            ],
            out_specs=pl.BlockSpec((block_b, N, dim), lambda i: (i, 0, 0)),
            compiler_params=cparams,
            cost_estimate=cost,
            interpret=interpret,
        )(x, params["w_qkv"], params["w_out"], params["b_out"])

    # Cross-attention: q from x, k/v from context.
    assert context.shape[0] == B and context.shape[2] == dim
    kernel = functools.partial(
        _cross_attn_kernel, heads=heads, dim_head=dim_head,
        block_b=block_b, n_q=N, n_kv=n_kv, compute_dtype=compute_dtype)
    return pl.pallas_call(
        kernel,
        out_shape=jax.ShapeDtypeStruct((B, N, dim), x.dtype),
        grid=grid,
        in_specs=[
            pl.BlockSpec((block_b, N, dim), lambda i: (i, 0, 0)),
            pl.BlockSpec((block_b, n_kv, dim), lambda i: (i, 0, 0)),
            w_spec((dim, H)),
            w_spec((dim, 2 * H)),
            w_spec((H, dim)),
            w_spec((1, dim)),
        ],
        out_specs=pl.BlockSpec((block_b, N, dim), lambda i: (i, 0, 0)),
        compiler_params=cparams,
        cost_estimate=cost,
        interpret=interpret,
    )(x, context, params["w_q"], params["w_kv"], params["w_out"],
      params["b_out"])


def reference_forward(x, w_q, w_k, w_v, w_out, b_out, heads, dim_head,
                      context=None):
    """Pure-JAX mirror of the PyTorch CrossFrameAttention.forward (eval)."""
    B, N, dim = x.shape
    H = heads * dim_head
    scale = dim_head ** (-0.5)
    ctx = x if context is None else context
    q = x @ w_q
    k = ctx @ w_k
    v = ctx @ w_v

    def split(t):  # 'b n (h d) -> b h n d'
        b, n, _ = t.shape
        return t.reshape(b, n, heads, dim_head).transpose(0, 2, 1, 3)

    q, k, v = split(q), split(k), split(v)
    sim = jnp.einsum("bhid,bhjd->bhij", q, k) * scale
    attn = jax.nn.softmax(sim, axis=-1)
    o = jnp.einsum("bhij,bhjd->bhid", attn, v)
    o = o.transpose(0, 2, 1, 3).reshape(B, N, H)
    return o @ w_out + b_out


if __name__ == "__main__":
    # x is (B, N, dim) as in forward(); small, layout-friendly shapes.
    B, N, dim = 2, 16, 32
    heads, dim_head = 4, 32
    H = heads * dim_head
    M = 8  # context length for the cross-attention check

    key = jax.random.PRNGKey(0)
    kx, kc, kq, kk, kv, ko, kb = jax.random.split(key, 7)
    x = jax.random.normal(kx, (B, N, dim), jnp.float32)
    ctx = jax.random.normal(kc, (B, M, dim), jnp.float32)
    # nn.Linear stores (out, in); we keep the transposed (in, out) layout.
    w_q = 0.2 * jax.random.normal(kq, (dim, H), jnp.float32)
    w_k = 0.2 * jax.random.normal(kk, (dim, H), jnp.float32)
    w_v = 0.2 * jax.random.normal(kv, (dim, H), jnp.float32)
    w_out = 0.1 * jax.random.normal(ko, (H, dim), jnp.float32)
    b_out = 0.1 * jax.random.normal(kb, (dim,), jnp.float32)

    params = prepare_params(w_q, w_k, w_v, w_out, b_out, heads, dim_head)

    # Self-attention (context=None), the module's default path.
    out = jax.block_until_ready(cross_frame_attention(x, params))
    ref = reference_forward(x, w_q, w_k, w_v, w_out, b_out, heads, dim_head)
    assert out.shape == (B, N, dim)
    err = float(jnp.max(jnp.abs(out - ref)))
    assert jnp.allclose(out, ref, rtol=5e-3, atol=5e-3), err

    # Cross-attention (explicit context) path.
    out_c = jax.block_until_ready(cross_frame_attention(x, params, context=ctx))
    ref_c = reference_forward(x, w_q, w_k, w_v, w_out, b_out, heads, dim_head,
                              context=ctx)
    err_c = float(jnp.max(jnp.abs(out_c - ref_c)))
    assert jnp.allclose(out_c, ref_c, rtol=5e-3, atol=5e-3), err_c

    print("KERNEL_OK")
</pallas_src>

<mosaic_0001>
module attributes {stable_mosaic.version = 11 : i64} {
  func.func @_self_attn_kernel(%arg0: i32, %arg1: memref<1x16x32xf32, #tpu.memory_space<vmem>>, %arg2: memref<32x384xf32, #tpu.memory_space<vmem>>, %arg3: memref<128x32xf32, #tpu.memory_space<vmem>>, %arg4: memref<1x32xf32, #tpu.memory_space<vmem>>, %arg5: memref<1x16x32xf32, #tpu.memory_space<vmem>>) attributes {dimension_semantics = [#tpu.dimension_semantics<parallel>], iteration_bounds = array<i64: 2>, scalar_prefetch = 0 : i64, scratch_operands = 0 : i64, tpu.core_type = #tpu.core_type<tc>, window_params = [{transform_indices = @transform_0, window_bounds = array<i64: 1, 16, 32>}, {pipeline_mode = #tpu.pipeline_mode<synchronous>, transform_indices = @transform_1, window_bounds = array<i64: 32, 384>}, {pipeline_mode = #tpu.pipeline_mode<synchronous>, transform_indices = @transform_2, window_bounds = array<i64: 128, 32>}, {pipeline_mode = #tpu.pipeline_mode<synchronous>, transform_indices = @transform_3, window_bounds = array<i64: 1, 32>}, {transform_indices = @transform_4, window_bounds = array<i64: 1, 16, 32>}]} {
    %c0 = arith.constant 0 : index
    %c0_0 = arith.constant 0 : index
    %c0_1 = arith.constant 0 : index
    %0 = vector.load %arg1[%c0, %c0_0, %c0_1] : memref<1x16x32xf32, #tpu.memory_space<vmem>>, vector<1x16x32xf32>
    %1 = vector.shape_cast %0 : vector<1x16x32xf32> to vector<16x32xf32>
    %c0_2 = arith.constant 0 : index
    %c0_3 = arith.constant 0 : index
    %2 = vector.load %arg2[%c0_2, %c0_3] : memref<32x384xf32, #tpu.memory_space<vmem>>, vector<32x384xf32>
    %cst = arith.constant dense<0.000000e+00> : vector<16x384xf32>
    %3 = tpu.matmul %1, %2, %cst {dimension_numbers = #tpu.dot_dimension_numbers<[1], [0], [0], [1], [0, 0, 1, 1], [], []>} : vector<16x32xf32>, vector<32x384xf32>, vector<16x384xf32> -> vector<16x384xf32>
    %4 = vector.extract_strided_slice %3 {offsets = [0, 0], sizes = [16, 128], strides = [1, 1]} : vector<16x384xf32> to vector<16x128xf32>
    %5 = vector.extract_strided_slice %3 {offsets = [0, 128], sizes = [16, 256], strides = [1, 1]} : vector<16x384xf32> to vector<16x256xf32>
    %c0_4 = arith.constant 0 : index
    %c0_5 = arith.constant 0 : index
    %6 = vector.load %arg3[%c0_4, %c0_5] : memref<128x32xf32, #tpu.memory_space<vmem>>, vector<128x32xf32>
    %c0_6 = arith.constant 0 : index
    %c0_7 = arith.constant 0 : index
    %7 = vector.load %arg4[%c0_6, %c0_7] : memref<1x32xf32, #tpu.memory_space<vmem>>, vector<1x32xf32>
    %8 = vector.shape_cast %7 : vector<1x32xf32> to vector<1x32xf32>
    %9 = vector.broadcast %8 : vector<1x32xf32> to vector<16x32xf32>
    %10 = vector.extract_strided_slice %4 {offsets = [0, 0], sizes = [16, 32], strides = [1, 1]} : vector<16x128xf32> to vector<16x32xf32>
    %11 = vector.shape_cast %10 : vector<16x32xf32> to vector<1x16x32xf32>
    %12 = vector.extract_strided_slice %5 {offsets = [0, 0], sizes = [16, 32], strides = [1, 1]} : vector<16x256xf32> to vector<16x32xf32>
    %13 = vector.shape_cast %12 : vector<16x32xf32> to vector<1x16x32xf32>
    %14 = vector.extract_strided_slice %5 {offsets = [0, 128], sizes = [16, 32], strides = [1, 1]} : vector<16x256xf32> to vector<16x32xf32>
    %15 = vector.shape_cast %14 : vector<16x32xf32> to vector<1x16x32xf32>
    %cst_8 = arith.constant dense<0.000000e+00> : vector<1x16x16xf32>
    %16 = tpu.matmul %11, %13, %cst_8 {dimension_numbers = #tpu.dot_dimension_numbers<[2], [2], [1], [1], [0, 0, 0, 1, 1, 1], [0], [0]>} : vector<1x16x32xf32>, vector<1x16x32xf32>, vector<1x16x16xf32> -> vector<1x16x16xf32>
    %cst_9 = arith.constant dense<0xFF800000> : vector<1x16xf32>
    %17 = vector.multi_reduction <maximumf>, %16, %cst_9 [2] : vector<1x16x16xf32> to vector<1x16xf32>
    %18 = vector.shape_cast %17 : vector<1x16xf32> to vector<1x16x1xf32>
    %19 = vector.broadcast %18 : vector<1x16x1xf32> to vector<1x16x16xf32>
    %20 = arith.subf %16, %19 : vector<1x16x16xf32>
    %21 = math.exp %20 : vector<1x16x16xf32>
    %cst_10 = arith.constant dense<0.000000e+00> : vector<1x16xf32>
    %22 = vector.multi_reduction <add>, %21, %cst_10 [2] : vector<1x16x16xf32> to vector<1x16xf32>
    %23 = vector.shape_cast %22 : vector<1x16xf32> to vector<1x16x1xf32>
    %24 = tpu.reciprocal %23 {approx = true} : vector<1x16x1xf32> -> vector<1x16x1xf32>
    %cst_11 = arith.constant dense<0.000000e+00> : vector<1x16x32xf32>
    %25 = tpu.matmul %21, %15, %cst_11 {dimension_numbers = #tpu.dot_dimension_numbers<[2], [1], [1], [2], [0, 0, 0, 1, 1, 2], [0], [0]>} : vector<1x16x16xf32>, vector<1x16x32xf32>, vector<1x16x32xf32> -> vector<1x16x32xf32>
    %26 = vector.broadcast %24 : vector<1x16x1xf32> to vector<1x16x32xf32>
    %27 = arith.mulf %25, %26 : vector<1x16x32xf32>
    %28 = vector.shape_cast %27 : vector<1x16x32xf32> to vector<16x32xf32>
    %29 = vector.extract_strided_slice %6 {offsets = [0, 0], sizes = [32, 32], strides = [1, 1]} : vector<128x32xf32> to vector<32x32xf32>
    %cst_12 = arith.constant dense<0.000000e+00> : vector<16x32xf32>
    %30 = tpu.matmul %28, %29, %cst_12 {dimension_numbers = #tpu.dot_dimension_numbers<[1], [0], [0], [1], [0, 0, 1, 1], [], []>} : vector<16x32xf32>, vector<32x32xf32>, vector<16x32xf32> -> vector<16x32xf32>
    %31 = arith.addf %9, %30 : vector<16x32xf32>
    %32 = vector.extract_strided_slice %4 {offsets = [0, 32], sizes = [16, 32], strides = [1, 1]} : vector<16x128xf32> to vector<16x32xf32>
    %33 = vector.shape_cast %32 : vector<16x32xf32> to vector<1x16x32xf32>
    %34 = vector.extract_strided_slice %5 {offsets = [0, 32], sizes = [16, 32], strides = [1, 1]} : vector<16x256xf32> to vector<16x32xf32>
    %35 = vector.shape_cast %34 : vector<16x32xf32> to vector<1x16x32xf32>
    %36 = vector.extract_strided_slice %5 {offsets = [0, 160], sizes = [16, 32], strides = [1, 1]} : vector<16x256xf32> to vector<16x32xf32>
    %37 = vector.shape_cast %36 : vector<16x32xf32> to vector<1x16x32xf32>
    %cst_13 = arith.constant dense<0.000000e+00> : vector<1x16x16xf32>
    %38 = tpu.matmul %33, %35, %cst_13 {dimension_numbers = #tpu.dot_dimension_numbers<[2], [2], [1], [1], [0, 0, 0, 1, 1, 1], [0], [0]>} : vector<1x16x32xf32>, vector<1x16x32xf32>, vector<1x16x16xf32> -> vector<1x16x16xf32>
    %cst_14 = arith.constant dense<0xFF800000> : vector<1x16xf32>
    %39 = vector.multi_reduction <maximumf>, %38, %cst_14 [2] : vector<1x16x16xf32> to vector<1x16xf32>
    %40 = vector.shape_cast %39 : vector<1x16xf32> to vector<1x16x1xf32>
    %41 = vector.broadcast %40 : vector<1x16x1xf32> to vector<1x16x16xf32>
    %42 = arith.subf %38, %41 : vector<1x16x16xf32>
    %43 = math.exp %42 : vector<1x16x16xf32>
    %cst_15 = arith.constant dense<0.000000e+00> : vector<1x16xf32>
    %44 = vector.multi_reduction <add>, %43, %cst_15 [2] : vector<1x16x16xf32> to vector<1x16xf32>
    %45 = vector.shape_cast %44 : vector<1x16xf32> to vector<1x16x1xf32>
    %46 = tpu.reciprocal %45 {approx = true} : vector<1x16x1xf32> -> vector<1x16x1xf32>
    %cst_16 = arith.constant dense<0.000000e+00> : vector<1x16x32xf32>
    %47 = tpu.matmul %43, %37, %cst_16 {dimension_numbers = #tpu.dot_dimension_numbers<[2], [1], [1], [2], [0, 0, 0, 1, 1, 2], [0], [0]>} : vector<1x16x16xf32>, vector<1x16x32xf32>, vector<1x16x32xf32> -> vector<1x16x32xf32>
    %48 = vector.broadcast %46 : vector<1x16x1xf32> to vector<1x16x32xf32>
    %49 = arith.mulf %47, %48 : vector<1x16x32xf32>
    %50 = vector.shape_cast %49 : vector<1x16x32xf32> to vector<16x32xf32>
    %51 = vector.extract_strided_slice %6 {offsets = [32, 0], sizes = [32, 32], strides = [1, 1]} : vector<128x32xf32> to vector<32x32xf32>
    %cst_17 = arith.constant dense<0.000000e+00> : vector<16x32xf32>
    %52 = tpu.matmul %50, %51, %cst_17 {dimension_numbers = #tpu.dot_dimension_numbers<[1], [0], [0], [1], [0, 0, 1, 1], [], []>} : vector<16x32xf32>, vector<32x32xf32>, vector<16x32xf32> -> vector<16x32xf32>
    %53 = arith.addf %31, %52 : vector<16x32xf32>
    %54 = vector.extract_strided_slice %4 {offsets = [0, 64], sizes = [16, 32], strides = [1, 1]} : vector<16x128xf32> to vector<16x32xf32>
    %55 = vector.shape_cast %54 : vector<16x32xf32> to vector<1x16x32xf32>
    %56 = vector.extract_strided_slice %5 {offsets = [0, 64], sizes = [16, 32], strides = [1, 1]} : vector<16x256xf32> to vector<16x32xf32>
    %57 = vector.shape_cast %56 : vector<16x32xf32> to vector<1x16x32xf32>
    %58 = vector.extract_strided_slice %5 {offsets = [0, 192], sizes = [16, 32], strides = [1, 1]} : vector<16x256xf32> to vector<16x32xf32>
    %59 = vector.shape_cast %58 : vector<16x32xf32> to vector<1x16x32xf32>
    %cst_18 = arith.constant dense<0.000000e+00> : vector<1x16x16xf32>
    %60 = tpu.matmul %55, %57, %cst_18 {dimension_numbers = #tpu.dot_dimension_numbers<[2], [2], [1], [1], [0, 0, 0, 1, 1, 1], [0], [0]>} : vector<1x16x32xf32>, vector<1x16x32xf32>, vector<1x16x16xf32> -> vector<1x16x16xf32>
    %cst_19 = arith.constant dense<0xFF800000> : vector<1x16xf32>
    %61 = vector.multi_reduction <maximumf>, %60, %cst_19 [2] : vector<1x16x16xf32> to vector<1x16xf32>
    %62 = vector.shape_cast %61 : vector<1x16xf32> to vector<1x16x1xf32>
    %63 = vector.broadcast %62 : vector<1x16x1xf32> to vector<1x16x16xf32>
    %64 = arith.subf %60, %63 : vector<1x16x16xf32>
    %65 = math.exp %64 : vector<1x16x16xf32>
    %cst_20 = arith.constant dense<0.000000e+00> : vector<1x16xf32>
    %66 = vector.multi_reduction <add>, %65, %cst_20 [2] : vector<1x16x16xf32> to vector<1x16xf32>
    %67 = vector.shape_cast %66 : vector<1x16xf32> to vector<1x16x1xf32>
    %68 = tpu.reciprocal %67 {approx = true} : vector<1x16x1xf32> -> vector<1x16x1xf32>
    %cst_21 = arith.constant dense<0.000000e+00> : vector<1x16x32xf32>
    %69 = tpu.matmul %65, %59, %cst_21 {dimension_numbers = #tpu.dot_dimension_numbers<[2], [1], [1], [2], [0, 0, 0, 1, 1, 2], [0], [0]>} : vector<1x16x16xf32>, vector<1x16x32xf32>, vector<1x16x32xf32> -> vector<1x16x32xf32>
    %70 = vector.broadcast %68 : vector<1x16x1xf32> to vector<1x16x32xf32>
    %71 = arith.mulf %69, %70 : vector<1x16x32xf32>
    %72 = vector.shape_cast %71 : vector<1x16x32xf32> to vector<16x32xf32>
    %73 = vector.extract_strided_slice %6 {offsets = [64, 0], sizes = [32, 32], strides = [1, 1]} : vector<128x32xf32> to vector<32x32xf32>
    %cst_22 = arith.constant dense<0.000000e+00> : vector<16x32xf32>
    %74 = tpu.matmul %72, %73, %cst_22 {dimension_numbers = #tpu.dot_dimension_numbers<[1], [0], [0], [1], [0, 0, 1, 1], [], []>} : vector<16x32xf32>, vector<32x32xf32>, vector<16x32xf32> -> vector<16x32xf32>
    %75 = arith.addf %53, %74 : vector<16x32xf32>
    %76 = vector.extract_strided_slice %4 {offsets = [0, 96], sizes = [16, 32], strides = [1, 1]} : vector<16x128xf32> to vector<16x32xf32>
    %77 = vector.shape_cast %76 : vector<16x32xf32> to vector<1x16x32xf32>
    %78 = vector.extract_strided_slice %5 {offsets = [0, 96], sizes = [16, 32], strides = [1, 1]} : vector<16x256xf32> to vector<16x32xf32>
    %79 = vector.shape_cast %78 : vector<16x32xf32> to vector<1x16x32xf32>
    %80 = vector.extract_strided_slice %5 {offsets = [0, 224], sizes = [16, 32], strides = [1, 1]} : vector<16x256xf32> to vector<16x32xf32>
    %81 = vector.shape_cast %80 : vector<16x32xf32> to vector<1x16x32xf32>
    %cst_23 = arith.constant dense<0.000000e+00> : vector<1x16x16xf32>
    %82 = tpu.matmul %77, %79, %cst_23 {dimension_numbers = #tpu.dot_dimension_numbers<[2], [2], [1], [1], [0, 0, 0, 1, 1, 1], [0], [0]>} : vector<1x16x32xf32>, vector<1x16x32xf32>, vector<1x16x16xf32> -> vector<1x16x16xf32>
    %cst_24 = arith.constant dense<0xFF800000> : vector<1x16xf32>
    %83 = vector.multi_reduction <maximumf>, %82, %cst_24 [2] : vector<1x16x16xf32> to vector<1x16xf32>
    %84 = vector.shape_cast %83 : vector<1x16xf32> to vector<1x16x1xf32>
    %85 = vector.broadcast %84 : vector<1x16x1xf32> to vector<1x16x16xf32>
    %86 = arith.subf %82, %85 : vector<1x16x16xf32>
    %87 = math.exp %86 : vector<1x16x16xf32>
    %cst_25 = arith.constant dense<0.000000e+00> : vector<1x16xf32>
    %88 = vector.multi_reduction <add>, %87, %cst_25 [2] : vector<1x16x16xf32> to vector<1x16xf32>
    %89 = vector.shape_cast %88 : vector<1x16xf32> to vector<1x16x1xf32>
    %90 = tpu.reciprocal %89 {approx = true} : vector<1x16x1xf32> -> vector<1x16x1xf32>
    %cst_26 = arith.constant dense<0.000000e+00> : vector<1x16x32xf32>
    %91 = tpu.matmul %87, %81, %cst_26 {dimension_numbers = #tpu.dot_dimension_numbers<[2], [1], [1], [2], [0, 0, 0, 1, 1, 2], [0], [0]>} : vector<1x16x16xf32>, vector<1x16x32xf32>, vector<1x16x32xf32> -> vector<1x16x32xf32>
    %92 = vector.broadcast %90 : vector<1x16x1xf32> to vector<1x16x32xf32>
    %93 = arith.mulf %91, %92 : vector<1x16x32xf32>
    %94 = vector.shape_cast %93 : vector<1x16x32xf32> to vector<16x32xf32>
    %95 = vector.extract_strided_slice %6 {offsets = [96, 0], sizes = [32, 32], strides = [1, 1]} : vector<128x32xf32> to vector<32x32xf32>
    %cst_27 = arith.constant dense<0.000000e+00> : vector<16x32xf32>
    %96 = tpu.matmul %94, %95, %cst_27 {dimension_numbers = #tpu.dot_dimension_numbers<[1], [0], [0], [1], [0, 0, 1, 1], [], []>} : vector<16x32xf32>, vector<32x32xf32>, vector<16x32xf32> -> vector<16x32xf32>
    %97 = arith.addf %75, %96 : vector<16x32xf32>
    %98 = vector.shape_cast %97 : vector<16x32xf32> to vector<1x16x32xf32>
    %c0_28 = arith.constant 0 : index
    %c0_29 = arith.constant 0 : index
    %c0_30 = arith.constant 0 : index
    %99 = vector.load %arg5[%c0_28, %c0_29, %c0_30] : memref<1x16x32xf32, #tpu.memory_space<vmem>>, vector<1x16x32xf32>
    tpu.vector_store %arg5[%c0_28, %c0_29, %c0_30], %98 {strides = array<i32>} : memref<1x16x32xf32, #tpu.memory_space<vmem>>, vector<1x16x32xf32>,
    return
  }
  func.func @transform_0(%arg0: i32) -> (i32, i32, i32) {
    %c0_i32 = arith.constant 0 : i32
    %c0_i32_0 = arith.constant 0 : i32
    %c0_i32_1 = arith.constant 0 : i32
    return %arg0, %c0_i32, %c0_i32_0 : i32, i32, i32
  }
  func.func @transform_1(%arg0: i32) -> (i32, i32) {
    %c0_i32 = arith.constant 0 : i32
    %c0_i32_0 = arith.constant 0 : i32
    %c0_i32_1 = arith.constant 0 : i32
    return %c0_i32, %c0_i32_0 : i32, i32
  }
  func.func @transform_2(%arg0: i32) -> (i32, i32) {
    %c0_i32 = arith.constant 0 : i32
    %c0_i32_0 = arith.constant 0 : i32
    %c0_i32_1 = arith.constant 0 : i32
    return %c0_i32, %c0_i32_0 : i32, i32
  }
  func.func @transform_3(%arg0: i32) -> (i32, i32) {
    %c0_i32 = arith.constant 0 : i32
    %c0_i32_0 = arith.constant 0 : i32
    %c0_i32_1 = arith.constant 0 : i32
    return %c0_i32, %c0_i32_0 : i32, i32
  }
  func.func @transform_4(%arg0: i32) -> (i32, i32, i32) {
    %c0_i32 = arith.constant 0 : i32
    %c0_i32_0 = arith.constant 0 : i32
    %c0_i32_1 = arith.constant 0 : i32
    return %arg0, %c0_i32, %c0_i32_0 : i32, i32, i32
  }
}

</mosaic_0001>

<bundles_post_ra>
// kernel: tpu_custom_call.1
= control target key start
LH: loop header
LB: loop body
LE: loop exit
PB: predicated region body
PF: predicated region fallthrough
CT: control target
= control target key end

     0   :  { %9 = vsyncpa [#allocation3], 0  ;;  %s2302_s0 = inlined_call_operand.vmem [shape: f32[2,16,32], index: 0, kind: input, shape index: {}]   ;;  %s2303_s1 = inlined_call_operand.vmem [shape: f32[32,384], index: 1, kind: input, shape index: {}]   ;;  %s2304_s2 = inlined_call_operand.vmem [shape: f32[128,32], index: 2, kind: input, shape index: {}]   ;;  %s2305_s3 = inlined_call_operand.vmem [shape: f32[1,32], index: 3, kind: input, shape index: {}]   ;;  %s2306_s4 = inlined_call_operand.hbm [shape: f32[2,16,32], index: 4, kind: output, shape index: {}]  }
   0x1   :  { %11 = vsyncpa [#allocation3 + $0x1], 0  ;;  %s1990_s15 = smov 0   ;;  %s1992_s16 = smov 0  }
   0x2   :  { %s1994_s17 = smov 0   ;;  %s1996_s18 = smov 0  }
   0x3 LB: > { %s2011_s19 = sadd.s32 4294967295, %s1956_s18   ;;  %s1595_s20 = sadd.s32 4294967294, %s1956_s18   ;;  %s1956_s18 = sphi %s1996_s18, %s2312_s18   ;;  %s1952_s17 = sphi %s1994_s17, %s2311_s17   ;;  %s1948_s16 = sphi %s1992_s16, %s2310_s16   ;;  %s1944_s15 = sphi %s1990_s15, %s2309_s15  }
   0x4   : > { %s2015_s21 = sadd.s32 1, %s1956_s18   ;;  %s113_s22 = sadd.s32 1, %s1952_s17 }
   0x5   : > { %s110_s23 = ssub.s32 %s1956_s18, %s2015_s21  ;;  %p123_p0 = scmp.ne.s32.totalorder %s1952_s17, %s1948_s16 }
   0x6   : > { %p111_p1 = scmp.eq.s32.totalorder %s110_s23, 0  ;;  %p124_p2 = scmp.eq.s32.totalorder %s2011_s19, 1 }
   0x7   : > { %p129_p3 = scmp.ne.s32.totalorder %s1948_s16, %s1944_s15  ;;  %p130_p4 = scmp.eq.s32.totalorder %s1595_s20, 1 }
   0x8   : > { %s2026_s24 = scalar_select %p111_p1, %s1952_s17, %s113_s22  }
   0x9   : > { %p2028_p5 = por %p124_p2, %p123_p0  ;;  %p2032_p6 = por %p130_p4, %p129_p3 }
   0xa   : > { %p1598_p7 = scmp.ge.s32.totalorder %s1956_s18, 1  ;;  %p165_p8 = scmp.lt.s32.totalorder %s1956_s18, 3 }
   0xc   : > { %p166_p9 = pnand %p1598_p7, %p165_p8 }
   0xd   : > { %p191_p10 = scmp.lt.s32.totalorder (!%p166_p9), %s2011_s19, 1  ;;  %s1959_s13 = smov (!%p166_p9), 96  }
   0xe   : > { %169 = sbr.rel (%p166_p9) target bundleno = 1762 (0x6e2), region = 36  ;;  %s1961_s14 = smov (!%p166_p9), 32  }
   0xf   : > { %s188_s23 = sand.u32 (!%p166_p9), 1, %s1948_s16   ;;  %s1645_s29 = sshll.u32 (!%p166_p9), %s2011_s19, 8 }
  0x10   : > { %s2259_s6 = scalar_lea.hbm (!%p166_p9), %s2306_s4, %s1645_s29  ;;  %s2262_s7 = scalar_lea.sflag (!%p166_p9), [#allocation3], %s188_s23 }
  0x11   : > { %s1962_s8 = smov (!%p166_p9), [#allocation2]  }
  0x12   : > { %s1900_s9 = sshll.u32 (!%p166_p9), %s1962_s8, 4  ;;  %s1901_s9 = int_to_ptr.vmem [resolvable:$false] %s1900_s9 }
  0x13   : > { %v208_v0 = vld [vmem:[%s2303_s1 + $0x50] sm:$0xff]  ;;  %v207_v1 = vld [vmem:[%s2303_s1 + $0x48] sm:$0xff]  ;;  %v205_v2 = vld [vmem:[%s2303_s1 + $0x38] sm:$0xff]  ;;  %v1958_v4 = vmov 0.0   ;;  %s192_s11 = scalar_select %p191_p10, %s2011_s19, 1  ;;  %vm210_vm0 = vcmask 261120  }
  0x14   : > { %241 = vmatprep.subr.mxu0 %v208_v0  ;;  %v204_v3 = vld [vmem:[%s2303_s1 + $0x30] sm:$0xff]  ;;  %281 = vmatprep.mubr.f32.mxu0 %v1958_v4  ;;  %v202_v5 = vld [vmem:[%s2303_s1 + $0x20] sm:$0xff]  ;;  %v201_v6 = vld [vmem:[%s2303_s1 + $0x18] sm:$0xff]  ;;  %vm479_vm1 = vcmask 130048   ;;  %s1902_s10 = scalar_lea.vmem %s1901_s9, 512 }
  0x15   : > { %242 = vmatpush1.msra.mxu0 %v207_v1  ;;  %v199_v7 = vld [vmem:[%s2303_s1 + $0x8] sm:$0xff]  ;;  %s1644_s22 = sshll.u32 %s192_s11, 4  ;;  %v198_v8 = vld [vmem:[%s2303_s1] sm:$0xff]  ;;  %v209_v11 = vld [vmem:[%s2303_s1 + $0x58] sm:$0xff] }
  0x16   : > { %243 = vmatprep.subr.mxu0 %v205_v2  ;;  %s195_s30 = scalar_lea.vmem %s2302_s0, %s1644_s22  ;;  %v206_v12 = vld [vmem:[%s2303_s1 + $0x40] sm:$0xff]  ;;  %1708 = vmatprep.subr.mxu1 %v209_v11  ;;  %v203_v13 = vld [vmem:[%s2303_s1 + $0x28] sm:$0xff]  ;;  %v200_v14 = vld [vmem:[%s2303_s1 + $0x10] sm:$0xff]  ;;  %s1960_s22 = smov 64  }
  0x17   : > { %244 = vmatpush1.msra.mxu0 %v204_v3  ;;  %v196_v9 = vld [vmem:[%s195_s30] sm:$0xff]  ;;  %v197_v10 = vld [vmem:[%s195_s30 + $0x8] sm:$0xff]  ;;  %1709 = vmatpush3.msra.mxu1 %v209_v11  ;;  %v372_v33 = vld [vmem:[%s2304_s2 + $0x18] sm:$0xff] }
  0x18   : > { %245 = vmatprep.subr.mxu0 %v202_v5  ;;  %1716 = vmatprep.mubr.msk.f32.mxu1 %vm210_vm0, %v196_v9  ;;  %v371_v43 = vld [vmem:[%s2304_s2 + $0x10] sm:$0xff]  ;;  %v370_v45 = vld [vmem:[%s2304_s2 + $0x8] sm:$0xff]  ;;  %v369_v46 = vld [vmem:[%s2304_s2] sm:$0xff] }
  0x19   : > { %246 = vmatpush1.msra.mxu0 %v201_v6  ;;  %1710 = vmatprep.subr.mxu1 %v206_v12  ;;  %v376_v48 = vld [vmem:[%s2304_s2 + $0x38] sm:$0xff]  ;;  %v375_v59 = vld [vmem:[%s2304_s2 + $0x30] sm:$0xff]  ;;  %v374_v60 = vld [vmem:[%s2304_s2 + $0x28] sm:$0xff] }
  0x1a   : > { %247 = vmatprep.subr.mxu0 %v199_v7  ;;  %1711 = vmatpush3.msra.mxu1 %v206_v12  ;;  %v373_v61 = vld [vmem:[%s2304_s2 + $0x20] sm:$0xff] }
  0x1b   : > { %248 = vmatpush1.msra.mxu0 %v198_v8  ;;  %1712 = vmatprep.subr.mxu1 %v203_v13 }
  0x1c   : > { %1602 = vmatmul.mubr.msk.f32.vlgmr.msra.gmra.mxu0 %vm210_vm0, %v196_v9  ;;  %1713 = vmatpush3.msra.mxu1 %v203_v13 }
  0x1d   : > { %287 = vmatprep.mubr.f32.mxu0 %v1958_v4  ;;  %1714 = vmatprep.subr.mxu1 %v200_v14 }
  0x1e   : > { %1715 = vmatpush3.msra.mxu1 %v200_v14 }
  0x1f   : > { %1717 = vmatmul.mubr.msk.f32.vlgmr.msra.gmra.mxu1 %vm210_vm0, %v197_v10 }
  0x20   : > { %1603 = vmatmul.mubr.msk.f32.gmra.mxu0 %vm210_vm0, %v197_v10 }
  0xdc   : > { %v2083_v15 = vpop.f32.mrf.mxu0 }
  0xdd   : > { %666 = vrot.lane.b32.xlu1 %v2083_v15, %s1959_s13  ;;  %1723 = vmatprep.mubr.msk.f32.mxu0 %vm210_vm0, %v2083_v15 }
  0xde   : > { %v2089_v16 = vpop.f32.mrf.mxu0 }
  0xdf   : > { %v2111_v19 = vpop.f32.mrf.mxu1 }
  0xe0   : > { %v2091_v17 = vpop.f32.mrf.mxu0  ;;  %1726 = vmatprep.subr.mxu1 %v2111_v19 }
  0xe1   : > { %668 = vrot.lane.b32.xlu1 %v2091_v17, %s1959_s13  ;;  %1727 = vmatpush3.msra.mxu1 %v2111_v19  ;;  %v2123_v28 = vpop.f32.mrf.mxu1 }
  0xe2   : > { %v2095_v18 = vpop.f32.mrf.mxu0  ;;  %1728 = vmatprep.subr.mxu1 %v2123_v28 }
  0xe3   : > { %672 = vrot.lane.b32.xlu0 %v2095_v18, %s1959_s13  ;;  %1719 = vmatprep.subr.msk.mxu0 %vm210_vm0, %v2095_v18 }
  0xe4   : > { %1720 = vmatpush3.xpose.msk.msra.mxu0 %vm210_vm0, %v2095_v18  ;;  %1729 = vmatpush3.msra.mxu1 %v2123_v28 }
  0xe5   : > { %1721 = vmatprep.subr.msk.mxu0 %vm210_vm0, %v2089_v16  ;;  %1733 = vmatprep.subr.mxu1 %v372_v33 }
  0xe7   : > { %670 = vrot.lane.b32.xlu0 %v2089_v16, %s1959_s13 }
  0xe8   : > { %1722 = vmatpush3.xpose.msk.msra.mxu0 %vm210_vm0, %v2089_v16 }
  0xeb   : > { %1724 = vmatmul.mubr.msk.f32.vlgmr.msra.gmra.mxu0 %vm210_vm0, %v2091_v17 }
 0x14f   : > { %v667_v20 = vpop.permute.xlu1 %666 }
 0x150   : > { %1748 = vmatprep.mubr.msk.f32.mxu0 %vm210_vm0, %v667_v20 }
 0x153   : > { %v669_v23 = vpop.permute.xlu1 %668 }
 0x155   : > { %v673_v21 = vpop.permute.xlu0 %672 }
 0x156   : > { %1744 = vmatprep.subr.msk.mxu0 %vm210_vm0, %v673_v21 }
 0x157   : > { %1745 = vmatpush3.xpose.msk.msra.mxu0 %vm210_vm0, %v673_v21 }
 0x159   : > { %v671_v22 = vpop.permute.xlu0 %670 }
 0x15a   : > { %1746 = vmatprep.subr.msk.mxu0 %vm210_vm0, %v671_v22 }
 0x15b   : > { %1747 = vmatpush3.xpose.msk.msra.mxu0 %vm210_vm0, %v671_v22 }
 0x15c   : > { %1758 = vmatprep.subr.mxu0 %v376_v48 }
 0x15e   : > { %1749 = vmatmul.mubr.msk.f32.vlgmr.msra.gmra.mxu0 %vm210_vm0, %v669_v23 }
 0x15f   : > { %1759 = vmatpush3.msra.mxu0 %v376_v48 }
 0x160   : > { %1760 = vmatprep.subr.mxu0 %v375_v59 }
 0x161   : > { %1761 = vmatpush3.msra.mxu0 %v375_v59 }
 0x162   : > { %1762 = vmatprep.subr.mxu0 %v374_v60 }
 0x163   : > { %1763 = vmatpush3.msra.mxu0 %v374_v60 }
 0x164   : > { %1764 = vmatprep.subr.mxu0 %v373_v61 }
 0x165   : > { %1765 = vmatpush3.msra.mxu0 %v373_v61 }
 0x1ab   : > { %v1725_v24 = vpop.f32.mrf.mxu0 }
 0x1ac   : > { %v483_v25 = vsel %vm479_vm1, %v1725_v24, -inf }
 0x1ad   : > { %484 = vmax.xlane.f32.xlu1 %v483_v25  ;;  %v470_v26 = vpop.f32.mrf.mxu0 }
 0x1ae   : > { %v480_v27 = vsel %vm479_vm1, %v470_v26, -inf }
 0x1af   : > { %481 = vmax.xlane.f32.xlu0 %v480_v27 }
 0x1be   : > { %781 = vrot.lane.b32.xlu1 %v2111_v19, %s1959_s13 }
 0x21e   : > { %v1750_v29 = vpop.f32.mrf.mxu0 }
 0x21f   : > { %v760_v30 = vsel %vm479_vm1, %v1750_v29, -inf }
 0x220   : > { %v748_v31 = vpop.f32.mrf.mxu0  ;;  %761 = vmax.xlane.f32.xlu0 %v760_v30 }
 0x221   : > { %v757_v32 = vsel %vm479_vm1, %v748_v31, -inf }
 0x222   : > { %758 = vmax.xlane.f32.xlu1 %v757_v32 }
 0x233   : > { %957 = vrot.lane.b32.xlu1 %v2095_v18, %s1960_s22 }
 0x236   : > { %v485_v34 = vpop.xlane.xlu1 %484 }
 0x237   : > { %v487_v35 = vsub.f32 %v1725_v24, %v485_v34  ;;  %955 = vrot.lane.b32.xlu1 %v2089_v16, %s1960_s22 }
 0x238   : > { %v482_v36 = vpop.xlane.xlu0 %481 }
 0x239   : > { %v490_v37 = vmul.f32 1.442695, %v487_v35  ;;  %v486_v38 = vsub.f32 %v470_v26, %v482_v36 }
 0x23a   : > { %v782_v47 = vpop.permute.xlu1 %781 }
 0x23b   : > { %1864 = vpow2.f32 %v490_v37  ;;  %v488_v39 = vmul.f32 1.442695, %v486_v38  ;;  %953 = vrot.lane.b32.xlu1 %v2091_v17, %s1960_s22 }
 0x23d   : > { %1866 = vpow2.f32 %v488_v39  ;;  %v380_v39 = vld [vmem:[%s2304_s2 + $0x58] sm:$0xff] }
 0x248   : > { %v1865_v40 = vpop.eup %1864 }
 0x249   : > { %v495_v41 = vsel %vm479_vm1, %v1865_v40, 0.0 }
 0x24a   : > { %v1867_v42 = vpop.eup %1866  ;;  %496 = vadd.xlane.f32.xlu0 %v495_v41 }
 0x24b   : > { %1730 = vmatprep.mubr.msk.f32.mxu1 %vm479_vm1, %v1867_v42  ;;  %v492_v44 = vsel %vm479_vm1, %v1867_v42, 0.0 }
 0x24c   : > { %1731 = vmatmul.mubr.msk.f32.vlgmr.msra.gmra.mxu1 %vm479_vm1, %v1865_v40 }
 0x24d   : > { %1734 = vmatpush3.msra.mxu1 %v372_v33 }
 0x24e   : > { %493 = vadd.xlane.f32.xlu0 %v492_v44  ;;  %1735 = vmatprep.subr.mxu1 %v371_v43  ;;  %v379_v44 = vld [vmem:[%s2304_s2 + $0x50] sm:$0xff] }
 0x24f   : > { %1736 = vmatpush3.msra.mxu1 %v371_v43 }
 0x250   : > { %1737 = vmatprep.subr.mxu1 %v370_v45 }
 0x251   : > { %1738 = vmatpush3.msra.mxu1 %v370_v45  ;;  %v378_v45 = vld [vmem:[%s2304_s2 + $0x48] sm:$0xff] }
 0x252   : > { %1739 = vmatprep.subr.mxu1 %v369_v46 }
 0x253   : > { %1740 = vmatpush3.msra.mxu1 %v369_v46  ;;  %v377_v46 = vld [vmem:[%s2304_s2 + $0x40] sm:$0xff] }
 0x254   : > { %1751 = vmatprep.subr.mxu1 %v782_v47 }
 0x264   : > { %779 = vrot.lane.b32.xlu0 %v2123_v28, %s1959_s13 }
 0x268   : > { %951 = vrot.lane.b32.xlu0 %v2083_v15, %s1960_s22 }
 0x2a9   : > { %v762_v49 = vpop.xlane.xlu0 %761 }
 0x2aa   : > { %v764_v50 = vsub.f32 %v1750_v29, %v762_v49 }
 0x2ab   : > { %v759_v51 = vpop.xlane.xlu1 %758 }
 0x2ac   : > { %v767_v52 = vmul.f32 1.442695, %v764_v50  ;;  %v763_v53 = vsub.f32 %v748_v31, %v759_v51 }
 0x2ae   : > { %1868 = vpow2.f32 %v767_v52  ;;  %v765_v54 = vmul.f32 1.442695, %v763_v53 }
 0x2af   : > { %v958_v7 = vpop.permute.xlu1 %957 }
 0x2b0   : > { %1870 = vpow2.f32 %v765_v54 }
 0x2b3   : > { %v956_v9 = vpop.permute.xlu1 %955 }
 0x2b7   : > { %v954_v10 = vpop.permute.xlu1 %953 }
 0x2bb   : > { %v1869_v55 = vpop.eup %1868 }
 0x2bc   : > { %v772_v56 = vsel %vm479_vm1, %v1869_v55, 0.0 }
 0x2bd   : > { %v1871_v57 = vpop.eup %1870  ;;  %773 = vadd.xlane.f32.xlu1 %v772_v56 }
 0x2be   : > { %v769_v58 = vsel %vm479_vm1, %v1871_v57, 0.0 }
 0x2bf   : > { %770 = vadd.xlane.f32.xlu0 %v769_v58 }
 0x2ce   : > { %1238 = vrot.lane.b32.xlu1 %v2089_v16, %s1961_s14 }
 0x2d2   : > { %1236 = vrot.lane.b32.xlu1 %v2091_v17, %s1961_s14 }
 0x2d3   : > { %v497_v62 = vpop.xlane.xlu0 %496 }
 0x2d5   : > { %1240 = vrot.lane.b32.xlu0 %v2095_v18, %s1961_s14 }
 0x2d7   : > { %v494_v63 = vpop.xlane.xlu0 %493 }
 0x2d8   : > { %1872 = vrcp.f32 %v494_v63 }
 0x2d9   : > { %1234 = vrot.lane.b32.xlu0 %v2083_v15, %s1961_s14  ;;  %1874 = vrcp.f32 %v497_v62 }
 0x2db   : > { %v780_v5 = vpop.permute.xlu0 %779 }
 0x2df   : > { %v952_v8 = vpop.permute.xlu0 %951 }
 0x2e5   : > { %v1873_v1 = vpop.eup %1872 }
 0x2e6   : > { %v1875_v3 = vpop.eup %1874 }
 0x30c   : > { %v1732_v0 = vpop.f32.mrf.mxu1 }
 0x30d   : > { %v582_v6 = vmul.f32 %v1875_v3, %v1732_v0 }
 0x30e   : > { %v572_v2 = vpop.f32.mrf.mxu1 }
 0x30f   : > { %v581_v4 = vmul.f32 %v1873_v1, %v572_v2 }
 0x311   : > { %1741 = vmatprep.mubr.msk.f32.mxu1 %vm210_vm0, %v581_v4 }
 0x312   : > { %1742 = vmatmul.mubr.msk.f32.vlgmr.msra.gmra.mxu1 %vm210_vm0, %v582_v6 }
 0x313   : > { %1752 = vmatpush3.msra.mxu1 %v782_v47  ;;  %1755 = vmatprep.mubr.msk.f32.mxu1 %vm479_vm1, %v1871_v57  ;;  %v1606_v47 = vld [vmem:[%s2305_s3] ss:$0 sm:$0xff] }
 0x314   : > { %1753 = vmatprep.subr.mxu1 %v780_v5 }
 0x315   : > { %1754 = vmatpush3.msra.mxu1 %v780_v5 }
 0x316   : > { %1769 = vmatprep.subr.msk.mxu1 %vm210_vm0, %v958_v7  ;;  %1756 = vmatmul.mubr.msk.f32.vlgmr.msra.gmra.mxu1 %vm479_vm1, %v1869_v55 }
 0x317   : > { %1770 = vmatpush3.xpose.msk.msra.mxu1 %vm210_vm0, %v958_v7  ;;  %1773 = vmatprep.mubr.msk.f32.mxu1 %vm210_vm0, %v952_v8 }
 0x318   : > { %1771 = vmatprep.subr.msk.mxu1 %vm210_vm0, %v956_v9 }
 0x31b   : > { %1772 = vmatpush3.xpose.msk.msra.mxu1 %vm210_vm0, %v956_v9 }
 0x31e   : > { %1774 = vmatmul.mubr.msk.f32.vlgmr.msra.gmra.mxu1 %vm210_vm0, %v954_v10 }
 0x346   : > { %v774_v13 = vpop.xlane.xlu1 %773 }
 0x348   : > { %v771_v11 = vpop.xlane.xlu0 %770 }
 0x349   : > { %1876 = vrcp.f32 %v771_v11 }
 0x34a   : > { %1878 = vrcp.f32 %v774_v13  ;;  %v1239_v24 = vpop.permute.xlu1 %1238  ;;  %v383_v13 = vld [vmem:[%s2304_s2 + $0x70] sm:$0xff] }
 0x34c   : > { %v1241_v12 = vpop.permute.xlu0 %1240 }
 0x34d   : > { %1794 = vmatprep.subr.msk.mxu0 %vm210_vm0, %v1241_v12 }
 0x34e   : > { %v1237_v30 = vpop.permute.xlu1 %1236 }
 0x350   : > { %v1235_v23 = vpop.permute.xlu0 %1234 }
 0x356   : > { %v1877_v17 = vpop.eup %1876 }
 0x357   : > { %v1879_v20 = vpop.eup %1878 }
 0x3d2   : > { %v1743_v14 = vpop.f32.mrf.mxu1 }
 0x3d3   : > { %v665_v48 = vadd.f32 %v1743_v14, %v1606_v47  ;;  %v382_v14 = vld [vmem:[%s2304_s2 + $0x68] sm:$0xff] }
 0x3d4   : > { %v2190_v15 = vpop.f32.mrf.mxu1 }
 0x3d5   : > { %v664_v50 = vadd.f32 %v1606_v47, %v2190_v15  ;;  %v381_v15 = vld [vmem:[%s2304_s2 + $0x60] sm:$0xff] }
 0x3d6   : > { %v1757_v16 = vpop.f32.mrf.mxu1 }
 0x3d7   : > { %v867_v22 = vmul.f32 %v1879_v20, %v1757_v16 }
 0x3d8   : > { %v857_v18 = vpop.f32.mrf.mxu1 }
 0x3d9   : > { %v866_v21 = vmul.f32 %v1877_v17, %v857_v18 }
 0x3db   : > { %1766 = vmatprep.mubr.msk.f32.mxu0 %vm210_vm0, %v866_v21 }
 0x3dc   : > { %1767 = vmatmul.mubr.msk.f32.vlgmr.msra.gmra.mxu0 %vm210_vm0, %v867_v22 }
 0x3dd   : > { %1795 = vmatpush3.xpose.msk.msra.mxu0 %vm210_vm0, %v1241_v12  ;;  %1798 = vmatprep.mubr.msk.f32.mxu0 %vm210_vm0, %v1235_v23  ;;  %v384_v12 = vld [vmem:[%s2304_s2 + $0x78] sm:$0xff] }
 0x3de   : > { %v1775_v25 = vpop.f32.mrf.mxu1  ;;  %1796 = vmatprep.subr.msk.mxu0 %vm210_vm0, %v1239_v24 }
 0x3df   : > { %v1045_v26 = vsel %vm479_vm1, %v1775_v25, -inf }
 0x3e0   : > { %1046 = vmax.xlane.f32.xlu1 %v1045_v26  ;;  %v1033_v27 = vpop.f32.mrf.mxu1 }
 0x3e1   : > { %1797 = vmatpush3.xpose.msk.msra.mxu0 %vm210_vm0, %v1239_v24  ;;  %v1042_v29 = vsel %vm479_vm1, %v1033_v27, -inf }
 0x3e2   : > { %1043 = vmax.xlane.f32.xlu0 %v1042_v29  ;;  %1808 = vmatprep.subr.mxu0 %v384_v12 }
 0x3e4   : > { %1799 = vmatmul.mubr.msk.f32.vlgmr.msra.gmra.mxu0 %vm210_vm0, %v1237_v30 }
 0x3e5   : > { %1809 = vmatpush3.msra.mxu0 %v384_v12 }
 0x3e6   : > { %1810 = vmatprep.subr.mxu0 %v383_v13 }
 0x3e7   : > { %1811 = vmatpush3.msra.mxu0 %v383_v13 }
 0x3e8   : > { %1812 = vmatprep.subr.mxu0 %v382_v14 }
 0x3e9   : > { %1813 = vmatpush3.msra.mxu0 %v382_v14 }
 0x3ea   : > { %1814 = vmatprep.subr.mxu0 %v381_v15 }
 0x3eb   : > { %1815 = vmatpush3.msra.mxu0 %v381_v15 }
 0x3f1   : > { %1062 = vrot.lane.b32.xlu1 %v2123_v28, %s1960_s22 }
 0x3f8   : > { %1064 = vrot.lane.b32.xlu0 %v2111_v19, %s1960_s22  ;;  %s1599_s22 = sshll.u32 %s188_s23, 4 }
 0x3f9   : > { %s190_s27 = scalar_lea.vmem [#allocation2], %s1599_s22 }
 0x3fa   : > { %s1533_s28 = sshll.u32 %s190_s27, 4  ;;  %s2253_s28 = int_to_ptr.vmem [resolvable:$true] %s1533_s28 }
 0x3fb   : > { %s1896_s19 = scalar_lea.vmem %s2253_s28, 256  ;;  %p1903_p0 = scmp.lt.s32.totalorder %s2253_s28, %s1901_s9 }
 0x3fc   : > { %p1897_p11 = scmp.ne.s32.totalorder %s2253_s28, %s1896_s19  ;;  %p1904_p1 = scmp.lt.s32.totalorder %s1902_s10, %s1896_s19 }
 0x3fe   : > { %p1898_p12 = pnand %p1897_p11, %p2028_p5  ;;  %p1905_p2 = por %p1904_p1, %p1903_p0 }
 0x400   : > { %p1899_p13 = pneg %p1898_p12 }
 0x402   : > { %p1906_p3 = pnand %p1905_p2, %p1899_p13 }
 0x469   : > { %v1047_v31 = vpop.xlane.xlu1 %1046 }
 0x46a   : > { %v1049_v32 = vsub.f32 %v1775_v25, %v1047_v31 }
 0x46b   : > { %v1044_v33 = vpop.xlane.xlu0 %1043 }
 0x46c   : > { %v1052_v34 = vmul.f32 1.442695, %v1049_v32  ;;  %v1048_v35 = vsub.f32 %v1033_v27, %v1044_v33 }
 0x46d   : > { %v1063_v38 = vpop.permute.xlu1 %1062 }
 0x46e   : > { %1880 = vpow2.f32 %v1052_v34  ;;  %v1050_v36 = vmul.f32 1.442695, %v1048_v35 }
 0x46f   : > { %v1065_v37 = vpop.permute.xlu0 %1064 }
 0x470   : > { %1882 = vpow2.f32 %v1050_v36  ;;  %1776 = vmatprep.subr.mxu1 %v1065_v37 }
 0x471   : > { %1777 = vmatpush3.msra.mxu1 %v1065_v37 }
 0x472   : > { %1778 = vmatprep.subr.mxu1 %v1063_v38 }
 0x473   : > { %1779 = vmatpush3.msra.mxu1 %v1063_v38 }
 0x474   : > { %1783 = vmatprep.subr.mxu1 %v380_v39 }
 0x47b   : > { %v1881_v40 = vpop.eup %1880 }
 0x47c   : > { %v1057_v41 = vsel %vm479_vm1, %v1881_v40, 0.0 }
 0x47d   : > { %v1883_v42 = vpop.eup %1882  ;;  %1058 = vadd.xlane.f32.xlu1 %v1057_v41 }
 0x47e   : > { %1780 = vmatprep.mubr.msk.f32.mxu1 %vm479_vm1, %v1883_v42  ;;  %v1054_v43 = vsel %vm479_vm1, %v1883_v42, 0.0 }
 0x47f   : > { %1055 = vadd.xlane.f32.xlu0 %v1054_v43  ;;  %1781 = vmatmul.mubr.msk.f32.vlgmr.msra.gmra.mxu1 %vm479_vm1, %v1881_v40 }
 0x480   : > { %1784 = vmatpush3.msra.mxu1 %v380_v39 }
 0x481   : > { %1785 = vmatprep.subr.mxu1 %v379_v44 }
 0x482   : > { %1786 = vmatpush3.msra.mxu1 %v379_v44 }
 0x483   : > { %1787 = vmatprep.subr.mxu1 %v378_v45 }
 0x484   : > { %1788 = vmatpush3.msra.mxu1 %v378_v45 }
 0x485   : > { %1789 = vmatprep.subr.mxu1 %v377_v46 }
 0x486   : > { %1790 = vmatpush3.msra.mxu1 %v377_v46 }
 0x48e   : > { %1347 = vrot.lane.b32.xlu1 %v2111_v19, %s1961_s14 }
 0x49c   : > { %v1768_v49 = vpop.f32.mrf.mxu0 }
 0x49d   : > { %v950_v51 = vadd.f32 %v1768_v49, %v665_v48 }
 0x49e   : > { %v940_v52 = vpop.f32.mrf.mxu0 }
 0x49f   : > { %v949_v53 = vadd.f32 %v940_v52, %v664_v50 }
 0x4a4   : > { %v1800_v54 = vpop.f32.mrf.mxu0 }
 0x4a5   : > { %v1328_v55 = vsel %vm479_vm1, %v1800_v54, -inf }
 0x4a6   : > { %v1316_v56 = vpop.f32.mrf.mxu0  ;;  %1329 = vmax.xlane.f32.xlu0 %v1328_v55 }
 0x4a7   : > { %v1325_v57 = vsel %vm479_vm1, %v1316_v56, -inf }
 0x4aa   : > { %1326 = vmax.xlane.f32.xlu0 %v1325_v57 }
 0x4c0   : > { %1345 = vrot.lane.b32.xlu0 %v2123_v28, %s1961_s14 }
 0x506   : > { %v1059_v19 = vpop.xlane.xlu1 %1058 }
 0x508   : > { %v1056_v59 = vpop.xlane.xlu0 %1055 }
 0x509   : > { %1884 = vrcp.f32 %v1056_v59 }
 0x50a   : > { %v1348_v58 = vpop.permute.xlu1 %1347 }
 0x50b   : > { %1801 = vmatprep.subr.mxu1 %v1348_v58 }
 0x516   : > { %v1885_v3 = vpop.eup %1884 }
 0x52f   : > { %v1330_v60 = vpop.xlane.xlu0 %1329 }
 0x530   : > { %v1332_v61 = vsub.f32 %v1800_v54, %v1330_v60 }
 0x532   : > { %v1335_v62 = vmul.f32 1.442695, %v1332_v61 }
 0x533   : > { %v1327_v63 = vpop.xlane.xlu0 %1326 }
 0x534   : > { %1886 = vpow2.f32 %v1335_v62  ;;  %v1331_v0 = vsub.f32 %v1316_v56, %v1327_v63 }
 0x535   : > { %1888 = vrcp.f32 %v1059_v19 }
 0x536   : > { %v1333_v1 = vmul.f32 1.442695, %v1331_v0 }
 0x537   : > { %v1346_v10 = vpop.permute.xlu0 %1345 }
 0x538   : > { %1890 = vpow2.f32 %v1333_v1 }
 0x53f   : > { %v1782_v2 = vpop.f32.mrf.mxu1 }
 0x541   : > { %v1887_v4 = vpop.eup %1886  ;;  %v1140_v5 = vpop.f32.mrf.mxu1 }
 0x542   : > { %v1889_v6 = vpop.eup %1888  ;;  %v1149_v28 = vmul.f32 %v1885_v3, %v1140_v5  ;;  %v1340_v7 = vsel %vm479_vm1, %v1887_v4, 0.0 }
 0x543   : > { %v1150_v8 = vmul.f32 %v1889_v6, %v1782_v2  ;;  %1341 = vadd.xlane.f32.xlu0 %v1340_v7 }
 0x544   : > { %1791 = vmatprep.mubr.msk.f32.mxu1 %vm210_vm0, %v1149_v28 }
 0x545   : > { %v1891_v9 = vpop.eup %1890  ;;  %1792 = vmatmul.mubr.msk.f32.vlgmr.msra.gmra.mxu1 %vm210_vm0, %v1150_v8 }
 0x546   : > { %1802 = vmatpush3.msra.mxu1 %v1348_v58  ;;  %1805 = vmatprep.mubr.msk.f32.mxu1 %vm479_vm1, %v1891_v9  ;;  %v1337_v11 = vsel %vm479_vm1, %v1891_v9, 0.0 }
 0x547   : > { %1803 = vmatprep.subr.mxu1 %v1346_v10  ;;  %1338 = vadd.xlane.f32.xlu1 %v1337_v11 }
 0x548   : > { %1804 = vmatpush3.msra.mxu1 %v1346_v10 }
 0x549   : > { %1806 = vmatmul.mubr.msk.f32.vlgmr.msra.gmra.mxu1 %vm479_vm1, %v1887_v4 }
 0x5cc   : > { %v1342_v17 = vpop.xlane.xlu0 %1341 }
 0x5d0   : > { %v1339_v16 = vpop.xlane.xlu1 %1338 }
 0x5d1   : > { %1892 = vrcp.f32 %v1339_v16 }
 0x5d2   : > { %1894 = vrcp.f32 %v1342_v17 }
 0x5de   : > { %v1893_v24 = vpop.eup %1892 }
 0x5df   : > { %v1895_v26 = vpop.eup %1894 }
 0x605   : > { %v1793_v18 = vpop.f32.mrf.mxu1 }
 0x606   : > { %v1233_v20 = vadd.f32 %v1793_v18, %v950_v51 }
 0x607   : > { %v1223_v21 = vpop.f32.mrf.mxu1 }
 0x608   : > { %v1232_v22 = vadd.f32 %v1223_v21, %v949_v53 }
 0x609   : > { %v1807_v23 = vpop.f32.mrf.mxu1 }
 0x60a   : > { %v1433_v29 = vmul.f32 %v1895_v26, %v1807_v23 }
 0x60b   : > { %v1423_v25 = vpop.f32.mrf.mxu1 }
 0x60c   : > { %v1432_v27 = vmul.f32 %v1893_v24, %v1423_v25 }
 0x60e   : > { %1816 = vmatprep.mubr.msk.f32.mxu0 %vm210_vm0, %v1432_v27 }
 0x60f   : > { %1817 = vmatmul.mubr.msk.f32.vlgmr.msra.gmra.mxu0 %vm210_vm0, %v1433_v29 }
 0x6cf   : > { %v1818_v30 = vpop.f32.mrf.mxu0 }
 0x6d0   : > { %v1516_v31 = vadd.f32 %v1818_v30, %v1233_v20 }
 0x6d1   : > { %v1506_v32 = vpop.f32.mrf.mxu0 }
 0x6d2   : > { %1518 = vst.msk [vmem:[%s190_s27 + $0x8] sm:$0xff] %vm210_vm0, %v1516_v31  ;;  %v1515_v33 = vadd.f32 %v1506_v32, %v1232_v22 }
 0x6d4   : > { %1517 = vst.msk [vmem:[%s190_s27] sm:$0xff] %vm210_vm0, %v1515_v33 }
 0x6d5   : > { %1909 = shalt.err (!%p1906_p3)
}
 0x6d6   : > { %s1910_s11 = scalar_lea.hbm %s2259_s6, 256  ;;  %s1914_s14 = scalar_lea.hbm %s2306_s4, 512 }
 0x6d7   : > { %p1911_p4 = scmp.ne.s32.totalorder %s2259_s6, %s1910_s11  ;;  %p1915_p9 = scmp.lt.s32.totalorder %s2259_s6, %s2306_s4 }
 0x6d8   : > { %p1916_p10 = scmp.lt.s32.totalorder %s1914_s14, %s1910_s11 }
 0x6d9   : > { %p1912_p7 = pnand %p1911_p4, %p2028_p5 }
 0x6da   : > { %p1917_p11 = por %p1916_p10, %p1915_p9 }
 0x6db   : > { %p1913_p8 = pneg %p1912_p7 }
 0x6dd   : > { %p1918_p12 = pnand %p1917_p11, %p1913_p8 }
 0x6df   : > { %1921 = shalt.err (!%p1918_p12)
}
 0x6e0   : > { %s1963_s22 = smov 128   ;;  %s1964_s27 = smov 8  }
 0x6e1   : > { %1819 = dma.vmem_to_hbm [thread:$0]  (%p2028_p5), %s2253_s28, 256, %s2259_s6, %s2262_s7, %s1963_s22, %s1963_s22, %s1964_s27  }
 0x6e2 PF: > { %p1825_p13 = scmp.ge.s32.totalorder %s1956_s18, 2  ;;  %s1548_s29 = sand.u32 1, %s1944_s15  }
 0x6e3   : > { %s1549_s30 = scalar_lea.sflag [#allocation3], %s1548_s29 }
 0x6e4   : > { %p1822_p0 = pnand %p1825_p13, %p2032_p6 }
 0x6e6   : > { %p1823_p1 = pneg %p1822_p0 }
 0x6e8   : > { %1939 = dma.done.wait (%p1823_p1), %s1549_s30, 256  }
 0x6e9   : > { %1941 = vsyncadd (%p1823_p1), %s1549_s30, 4294967040  ;;  %p14_p2 = scmp.ge.s32.totalorder %s2015_s21, 4   ;;  %s2309_s15 = smov %s1948_s16 }
 0x6ea   : > { %s2310_s16 = smov %s1952_s17  ;;  %s2311_s17 = smov %s2026_s24 }
 0x6eb   : > { %s2312_s18 = smov %s2015_s21  ;;  %16 = sbr.rel (!%p14_p2) target bundleno = 3 (0x3), region = 71 }
 0x6f0   :  { %1554 = vsyncpa [#allocation3], 1 }
 0x6f1   :  { %1556 = vsyncpa [#allocation3 + $0x1], 1 }

</bundles_post_ra>
